<compile_context>
chip_gen: v5e
topology: v5e:2x2
jax: 0.10.0
libtpu: 0.0.40
codegen_flags: <defaults>
</compile_context>

<pallas_src>
import functools

import jax
import jax.numpy as jnp
from jax import lax
from jax.experimental import pallas as pl
from jax.experimental.pallas import tpu as pltpu


def _round_up(x, m):
    return (x + m - 1) // m * m


# ----------------------------------------------------------------------------
# Pallas kernel:
#   phase 1 (hidden-tile j == 0):  word_emb + one-hot(type) @ type_tab
#                                  + one-hot(pos) @ pos_tab  -> LayerNorm
#                                  -> cache normalized rows (bf16) in scratch
#   phase 2 (every j):             normalized rows @ fused_weight + fused_bias
# ----------------------------------------------------------------------------
def _embeddings_kernel(we_ref, tid_ref, pid_ref, ttab_ref, ptab_ref,
                       w_ref, b_ref, o_ref, y_scratch, *, eps, inv_e):
    @pl.when(pl.program_id(1) == 0)
    def _():
        tm = we_ref.shape[0]
        x = we_ref[...].astype(jnp.float32)                       # (tm, E)

        # Token-type / position lookups as one-hot matmuls against the small
        # VMEM-resident tables (no (N, E) slabs materialized in HBM for them).
        t_sz = ttab_ref.shape[0]
        p_sz = ptab_ref.shape[0]
        t_onehot = (tid_ref[...] ==
                    lax.broadcasted_iota(jnp.int32, (tm, t_sz), 1)
                    ).astype(jnp.float32)
        p_onehot = (pid_ref[...] ==
                    lax.broadcasted_iota(jnp.int32, (tm, p_sz), 1)
                    ).astype(jnp.float32)
        x = x + jnp.dot(t_onehot, ttab_ref[...].astype(jnp.float32),
                        preferred_element_type=jnp.float32)
        x = x + jnp.dot(p_onehot, ptab_ref[...].astype(jnp.float32),
                        preferred_element_type=jnp.float32)

        # LayerNorm over features (biased variance, eps inside rsqrt) using
        # two single-pass reductions and a hoisted 1/E multiply.
        s = jnp.sum(x, axis=-1, keepdims=True)
        s2 = jnp.sum(x * x, axis=-1, keepdims=True)
        mean = s * inv_e
        var = jnp.maximum(s2 * inv_e - mean * mean, 0.0)
        xhat = (x - mean) * lax.rsqrt(var + eps)
        # gamma/beta are folded into w_ref / b_ref outside the kernel.
        # TODO(synk): nn.Dropout is identity in eval mode; no stochastic mask.
        y_scratch[...] = xhat.astype(jnp.bfloat16)

    # Projection to hidden on the MXU: bf16 x bf16 operands, f32 accumulate.
    out = jnp.dot(y_scratch[...], w_ref[...],
                  preferred_element_type=jnp.float32) + b_ref[...]
    o_ref[...] = out.astype(o_ref.dtype)


# ----------------------------------------------------------------------------
# pallas_call wrapper: padding, gamma/beta folding, tiling
# ----------------------------------------------------------------------------
def lean_gpt_embeddings_pallas(inputs_embeds, token_type_ids, position_ids,
                               type_emb, pos_emb, gamma, beta, w_map, b_map,
                               *, eps, tm=256, th=512, vmem_limit_bytes=None):
    """inputs_embeds: (N, E) word embeddings; ids: (N,); returns (N, H)."""
    n, e = inputs_embeds.shape
    h = w_map.shape[1]

    # Row tiling: large tile (multiple of 8/128) with padding of N (no assert).
    tm_eff = tm if n >= tm else _round_up(n, 8)
    n_pad = _round_up(n, tm_eff)
    if n_pad != n:
        pad = n_pad - n
        inputs_embeds = jnp.pad(inputs_embeds, ((0, pad), (0, 0)))
        token_type_ids = jnp.pad(token_type_ids, ((0, pad),))
        position_ids = jnp.pad(position_ids, ((0, pad),))

    # Hidden tiling + lane-dense (multiple-of-128) output stores.
    h_pad = _round_up(h, 128)
    th_eff = min(th, h_pad)
    if h_pad % th_eff:
        th_eff = h_pad  # fall back to a single hidden tile

    # Fold LayerNorm affine into the projection:
    #   (xhat*g + b) @ W + c == xhat @ (g[:,None]*W) + (b @ W + c)
    w_fused = gamma.astype(jnp.float32)[:, None] * w_map.astype(jnp.float32)
    b_fused = (beta.astype(jnp.float32) @ w_map.astype(jnp.float32)
               + b_map.astype(jnp.float32))
    if h_pad != h:
        w_fused = jnp.pad(w_fused, ((0, 0), (0, h_pad - h)))
        b_fused = jnp.pad(b_fused, ((0, h_pad - h),))
    w_fused = w_fused.astype(jnp.bfloat16)          # bf16 MXU operand
    b_fused = b_fused.reshape(1, h_pad)

    # Small type / position tables, row-padded to a sublane multiple.
    t_rows = _round_up(type_emb.shape[0], 8)
    p_rows = _round_up(pos_emb.shape[0], 8)
    type_tab = jnp.pad(type_emb, ((0, t_rows - type_emb.shape[0]), (0, 0)))
    pos_tab = jnp.pad(pos_emb, ((0, p_rows - pos_emb.shape[0]), (0, 0)))

    tid2 = token_type_ids.reshape(n_pad, 1).astype(jnp.int32)
    pid2 = position_ids.reshape(n_pad, 1).astype(jnp.int32)

    kernel = functools.partial(_embeddings_kernel, eps=eps, inv_e=1.0 / e)

    grid = (n_pad // tm_eff, h_pad // th_eff)
    out = pl.pallas_call(
        kernel,
        out_shape=jax.ShapeDtypeStruct((n_pad, h_pad), inputs_embeds.dtype),
        grid_spec=pltpu.PrefetchScalarGridSpec(
            num_scalar_prefetch=0,
            grid=grid,
            in_specs=[
                pl.BlockSpec((tm_eff, e), lambda i, j: (i, 0)),   # word embeds
                pl.BlockSpec((tm_eff, 1), lambda i, j: (i, 0)),   # token-type ids
                pl.BlockSpec((tm_eff, 1), lambda i, j: (i, 0)),   # position ids
                pl.BlockSpec((t_rows, e), lambda i, j: (0, 0)),   # type table
                pl.BlockSpec((p_rows, e), lambda i, j: (0, 0)),   # pos table
                pl.BlockSpec((e, th_eff), lambda i, j: (0, j)),   # fused weight
                pl.BlockSpec((1, th_eff), lambda i, j: (0, j)),   # fused bias
            ],
            out_specs=pl.BlockSpec((tm_eff, th_eff), lambda i, j: (i, j)),
            scratch_shapes=[pltpu.VMEM((tm_eff, e), jnp.bfloat16)],
        ),
        compiler_params=pltpu.CompilerParams(
            dimension_semantics=("parallel", "arbitrary"),
            vmem_limit_bytes=vmem_limit_bytes),
    )(inputs_embeds, tid2, pid2, type_tab, pos_tab, w_fused, b_fused)

    return out[:n, :h]


# ----------------------------------------------------------------------------
# Module-level wrapper: vocab gather (glue) + kernel call
# ----------------------------------------------------------------------------
def lean_gpt_embeddings_forward(params, input_ids, token_type_ids=None,
                                position_ids=None, past_key_values_length=0,
                                *, eps=1e-12, tm=256, th=512):
    b, s = input_ids.shape
    if token_type_ids is None:
        token_type_ids = jnp.zeros((b, s), dtype=jnp.int32)
    if position_ids is None:
        position_ids = (jnp.arange(s, dtype=jnp.int32)
                        + past_key_values_length)[None, :].repeat(b, axis=0)

    # Word-embedding gather over the large vocab table stays in plain JAX.
    inputs_embeds = jnp.take(params["word_emb"], input_ids, axis=0)   # (B,S,E)

    e = params["word_emb"].shape[1]
    h = params["w_map"].shape[1]

    out = lean_gpt_embeddings_pallas(
        inputs_embeds.reshape(b * s, e),
        token_type_ids.reshape(b * s),
        position_ids.reshape(b * s),
        params["type_emb"], params["pos_emb"],
        params["ln_gamma"], params["ln_beta"],
        params["w_map"], params["b_map"],
        eps=eps, tm=tm, th=th)
    return out.reshape(b, s, h)


def make_params(key, vocab_size, type_vocab_size, max_pos, emb_size,
                hidden_size, pad_token_id=0, dtype=jnp.float32):
    ks = jax.random.split(key, 7)
    word_emb = jax.random.normal(ks[0], (vocab_size, emb_size), dtype) * 0.02
    word_emb = word_emb.at[pad_token_id].set(0.0)   # nn.Embedding padding_idx
    type_emb = jax.random.normal(ks[1], (type_vocab_size, emb_size), dtype) * 0.02
    pos_emb = jax.random.normal(ks[2], (max_pos, emb_size), dtype) * 0.02
    ln_gamma = 1.0 + 0.1 * jax.random.normal(ks[3], (emb_size,), dtype)
    ln_beta = 0.02 * jax.random.normal(ks[4], (emb_size,), dtype)
    w_map = jax.random.normal(ks[5], (emb_size, hidden_size), dtype) * 0.02
    b_map = jax.random.normal(ks[6], (hidden_size,), dtype) * 0.02
    return dict(word_emb=word_emb, type_emb=type_emb, pos_emb=pos_emb,
                ln_gamma=ln_gamma, ln_beta=ln_beta, w_map=w_map, b_map=b_map)


if __name__ == "__main__":
    # Small config: vocab=128, type_vocab=2, max_pos=16, embedding=128,
    # hidden=192 (deliberately not a multiple of 128 -> exercises H padding).
    B, S, E, H = 2, 8, 128, 192
    VOCAB, TYPES, MAX_POS = 128, 2, 16
    EPS = 1e-12

    key = jax.random.PRNGKey(0)
    pkey, ikey, tkey = jax.random.split(key, 3)
    params = make_params(pkey, VOCAB, TYPES, MAX_POS, E, H)

    input_ids = jax.random.randint(ikey, (B, S), 0, VOCAB, dtype=jnp.int32)
    token_type_ids = jax.random.randint(tkey, (B, S), 0, TYPES, dtype=jnp.int32)

    out = lean_gpt_embeddings_forward(params, input_ids, token_type_ids, eps=EPS)
    out = jax.block_until_ready(out)
    assert out.shape == (B, S, H)

    # ---- reference (plain JAX, module math, f32) ----
    pos_ids = jnp.arange(S, dtype=jnp.int32)[None, :].repeat(B, axis=0)
    we = jnp.take(params["word_emb"], input_ids, axis=0)
    tte = jnp.take(params["type_emb"], token_type_ids, axis=0)
    pe = jnp.take(params["pos_emb"], pos_ids, axis=0)
    x = (we + tte + pe).astype(jnp.float32)
    mu = x.mean(-1, keepdims=True)
    var = ((x - mu) ** 2).mean(-1, keepdims=True)
    xhat = (x - mu) * jax.lax.rsqrt(var + EPS)
    y = xhat * params["ln_gamma"] + params["ln_beta"]
    ref_f32 = y @ params["w_map"] + params["b_map"]

    # Tight check against the kernel's intended bf16-operand math.
    w_fused = (params["ln_gamma"][:, None] * params["w_map"]
               ).astype(jnp.bfloat16).astype(jnp.float32)
    b_fused = params["ln_beta"] @ params["w_map"] + params["b_map"]
    ref_bf16 = (xhat.astype(jnp.bfloat16).astype(jnp.float32) @ w_fused
                + b_fused)

    assert jnp.allclose(out, ref_bf16, atol=5e-3, rtol=5e-3), \
        "mismatch vs bf16-operand reference"
    assert jnp.allclose(out, ref_f32, atol=2e-2, rtol=2e-2), \
        "mismatch vs f32 module reference"

    print("KERNEL_OK")
</pallas_src>

<mosaic_0001>
module attributes {stable_mosaic.version = 11 : i64} {
  func.func @_embeddings_kernel(%arg0: i32, %arg1: i32, %arg2: memref<16x128xf32, #tpu.memory_space<vmem>>, %arg3: memref<16x1xi32, #tpu.memory_space<vmem>>, %arg4: memref<16x1xi32, #tpu.memory_space<vmem>>, %arg5: memref<8x128xf32, #tpu.memory_space<vmem>>, %arg6: memref<16x128xf32, #tpu.memory_space<vmem>>, %arg7: memref<128x256xbf16, #tpu.memory_space<vmem>>, %arg8: memref<1x256xf32, #tpu.memory_space<vmem>>, %arg9: memref<16x256xf32, #tpu.memory_space<vmem>>, %arg10: memref<16x128xbf16, #tpu.memory_space<vmem>>) attributes {dimension_semantics = [#tpu.dimension_semantics<parallel>, #tpu.dimension_semantics<arbitrary>], iteration_bounds = array<i64: 1, 1>, scalar_prefetch = 0 : i64, scratch_operands = 1 : i64, tpu.core_type = #tpu.core_type<tc>, window_params = [{transform_indices = @transform_0, window_bounds = array<i64: 16, 128>}, {transform_indices = @transform_1, window_bounds = array<i64: 16, 1>}, {transform_indices = @transform_2, window_bounds = array<i64: 16, 1>}, {pipeline_mode = #tpu.pipeline_mode<synchronous>, transform_indices = @transform_3, window_bounds = array<i64: 8, 128>}, {pipeline_mode = #tpu.pipeline_mode<synchronous>, transform_indices = @transform_4, window_bounds = array<i64: 16, 128>}, {transform_indices = @transform_5, window_bounds = array<i64: 128, 256>}, {transform_indices = @transform_6, window_bounds = array<i64: 1, 256>}, {transform_indices = @transform_7, window_bounds = array<i64: 16, 256>}]} {
    %c0_i32 = arith.constant 0 : i32
    %0 = arith.cmpi eq, %arg1, %c0_i32 : i32
    %1 = arith.extui %0 : i1 to i32
    %c0_i32_0 = arith.constant 0 : i32
    %2 = arith.cmpi ne, %1, %c0_i32_0 : i32
    scf.if %2 {
      %c0_8 = arith.constant 0 : index
      %c0_9 = arith.constant 0 : index
      %10 = vector.load %arg2[%c0_8, %c0_9] : memref<16x128xf32, #tpu.memory_space<vmem>>, vector<16x128xf32>
      %c0_10 = arith.constant 0 : index
      %c0_11 = arith.constant 0 : index
      %11 = vector.load %arg3[%c0_10, %c0_11] : memref<16x1xi32, #tpu.memory_space<vmem>>, vector<16x1xi32>
      %12 = tpu.iota {dimensions = array<i32: 1>} : vector<16x8xi32>
      %13 = vector.broadcast %11 : vector<16x1xi32> to vector<16x8xi32>
      %14 = arith.cmpi eq, %13, %12 : vector<16x8xi32>
      %15 = arith.extui %14 : vector<16x8xi1> to vector<16x8xi32>
      %16 = arith.sitofp %15 : vector<16x8xi32> to vector<16x8xf32>
      %c0_12 = arith.constant 0 : index
      %c0_13 = arith.constant 0 : index
      %17 = vector.load %arg4[%c0_12, %c0_13] : memref<16x1xi32, #tpu.memory_space<vmem>>, vector<16x1xi32>
      %18 = tpu.iota {dimensions = array<i32: 1>} : vector<16x16xi32>
      %19 = vector.broadcast %17 : vector<16x1xi32> to vector<16x16xi32>
      %20 = arith.cmpi eq, %19, %18 : vector<16x16xi32>
      %21 = arith.extui %20 : vector<16x16xi1> to vector<16x16xi32>
      %22 = arith.sitofp %21 : vector<16x16xi32> to vector<16x16xf32>
      %c0_14 = arith.constant 0 : index
      %c0_15 = arith.constant 0 : index
      %23 = vector.load %arg5[%c0_14, %c0_15] : memref<8x128xf32, #tpu.memory_space<vmem>>, vector<8x128xf32>
      %cst_16 = arith.constant dense<0.000000e+00> : vector<16x128xf32>
      %24 = tpu.matmul %16, %23, %cst_16 {dimension_numbers = #tpu.dot_dimension_numbers<[1], [0], [0], [1], [0, 0, 1, 1], [], []>} : vector<16x8xf32>, vector<8x128xf32>, vector<16x128xf32> -> vector<16x128xf32>
      %25 = arith.addf %10, %24 : vector<16x128xf32>
      %c0_17 = arith.constant 0 : index
      %c0_18 = arith.constant 0 : index
      %26 = vector.load %arg6[%c0_17, %c0_18] : memref<16x128xf32, #tpu.memory_space<vmem>>, vector<16x128xf32>
      %cst_19 = arith.constant dense<0.000000e+00> : vector<16x128xf32>
      %27 = tpu.matmul %22, %26, %cst_19 {dimension_numbers = #tpu.dot_dimension_numbers<[1], [0], [0], [1], [0, 0, 1, 1], [], []>} : vector<16x16xf32>, vector<16x128xf32>, vector<16x128xf32> -> vector<16x128xf32>
      %28 = arith.addf %25, %27 : vector<16x128xf32>
      %cst_20 = arith.constant dense<0.000000e+00> : vector<16xf32>
      %29 = vector.multi_reduction <add>, %28, %cst_20 [1] : vector<16x128xf32> to vector<16xf32>
      %30 = vector.shape_cast %29 : vector<16xf32> to vector<16x1xf32>
      %31 = arith.mulf %28, %28 : vector<16x128xf32>
      %cst_21 = arith.constant dense<0.000000e+00> : vector<16xf32>
      %32 = vector.multi_reduction <add>, %31, %cst_21 [1] : vector<16x128xf32> to vector<16xf32>
      %33 = vector.shape_cast %32 : vector<16xf32> to vector<16x1xf32>
      %cst_22 = arith.constant 7.812500e-03 : f32
      %34 = vector.broadcast %cst_22 : f32 to vector<16x1xf32>
      %35 = arith.mulf %30, %34 : vector<16x1xf32>
      %cst_23 = arith.constant 7.812500e-03 : f32
      %36 = vector.broadcast %cst_23 : f32 to vector<16x1xf32>
      %37 = arith.mulf %33, %36 : vector<16x1xf32>
      %38 = arith.mulf %35, %35 : vector<16x1xf32>
      %39 = arith.subf %37, %38 : vector<16x1xf32>
      %cst_24 = arith.constant 0.000000e+00 : f32
      %40 = vector.broadcast %cst_24 : f32 to vector<16x1xf32>
      %41 = arith.maximumf %39, %40 : vector<16x1xf32>
      %42 = vector.broadcast %35 : vector<16x1xf32> to vector<16x128xf32>
      %43 = arith.subf %28, %42 : vector<16x128xf32>
      %cst_25 = arith.constant 9.99999996E-13 : f32
      %44 = vector.broadcast %cst_25 : f32 to vector<16x1xf32>
      %45 = arith.addf %41, %44 : vector<16x1xf32>
      %46 = math.rsqrt %45 : vector<16x1xf32>
      %47 = vector.broadcast %46 : vector<16x1xf32> to vector<16x128xf32>
      %48 = arith.mulf %43, %47 : vector<16x128xf32>
      %49 = arith.truncf %48 : vector<16x128xf32> to vector<16x128xbf16>
      %c0_26 = arith.constant 0 : index
      %c0_27 = arith.constant 0 : index
      %50 = vector.load %arg10[%c0_26, %c0_27] : memref<16x128xbf16, #tpu.memory_space<vmem>>, vector<16x128xbf16>
      tpu.vector_store %arg10[%c0_26, %c0_27], %49 {strides = array<i32>} : memref<16x128xbf16, #tpu.memory_space<vmem>>, vector<16x128xbf16>,
    } else {
    }
    %c0 = arith.constant 0 : index
    %c0_1 = arith.constant 0 : index
    %3 = vector.load %arg10[%c0, %c0_1] : memref<16x128xbf16, #tpu.memory_space<vmem>>, vector<16x128xbf16>
    %c0_2 = arith.constant 0 : index
    %c0_3 = arith.constant 0 : index
    %4 = vector.load %arg7[%c0_2, %c0_3] : memref<128x256xbf16, #tpu.memory_space<vmem>>, vector<128x256xbf16>
    %cst = arith.constant dense<0.000000e+00> : vector<16x256xf32>
    %5 = tpu.matmul %3, %4, %cst {dimension_numbers = #tpu.dot_dimension_numbers<[1], [0], [0], [1], [0, 0, 1, 1], [], []>} : vector<16x128xbf16>, vector<128x256xbf16>, vector<16x256xf32> -> vector<16x256xf32>
    %c0_4 = arith.constant 0 : index
    %c0_5 = arith.constant 0 : index
    %6 = vector.load %arg8[%c0_4, %c0_5] : memref<1x256xf32, #tpu.memory_space<vmem>>, vector<1x256xf32>
    %7 = vector.broadcast %6 : vector<1x256xf32> to vector<16x256xf32>
    %8 = arith.addf %5, %7 : vector<16x256xf32>
    %c0_6 = arith.constant 0 : index
    %c0_7 = arith.constant 0 : index
    %9 = vector.load %arg9[%c0_6, %c0_7] : memref<16x256xf32, #tpu.memory_space<vmem>>, vector<16x256xf32>
    tpu.vector_store %arg9[%c0_6, %c0_7], %8 {strides = array<i32>} : memref<16x256xf32, #tpu.memory_space<vmem>>, vector<16x256xf32>,
    return
  }
  func.func @transform_0(%arg0: i32, %arg1: i32) -> (i32, i32) {
    %c0_i32 = arith.constant 0 : i32
    %c0_i32_0 = arith.constant 0 : i32
    return %arg0, %c0_i32 : i32, i32
  }
  func.func @transform_1(%arg0: i32, %arg1: i32) -> (i32, i32) {
    %c0_i32 = arith.constant 0 : i32
    %c0_i32_0 = arith.constant 0 : i32
    return %arg0, %c0_i32 : i32, i32
  }
  func.func @transform_2(%arg0: i32, %arg1: i32) -> (i32, i32) {
    %c0_i32 = arith.constant 0 : i32
    %c0_i32_0 = arith.constant 0 : i32
    return %arg0, %c0_i32 : i32, i32
  }
  func.func @transform_3(%arg0: i32, %arg1: i32) -> (i32, i32) {
    %c0_i32 = arith.constant 0 : i32
    %c0_i32_0 = arith.constant 0 : i32
    %c0_i32_1 = arith.constant 0 : i32
    return %c0_i32, %c0_i32_0 : i32, i32
  }
  func.func @transform_4(%arg0: i32, %arg1: i32) -> (i32, i32) {
    %c0_i32 = arith.constant 0 : i32
    %c0_i32_0 = arith.constant 0 : i32
    %c0_i32_1 = arith.constant 0 : i32
    return %c0_i32, %c0_i32_0 : i32, i32
  }
  func.func @transform_5(%arg0: i32, %arg1: i32) -> (i32, i32) {
    %c0_i32 = arith.constant 0 : i32
    %c0_i32_0 = arith.constant 0 : i32
    return %c0_i32, %arg1 : i32, i32
  }
  func.func @transform_6(%arg0: i32, %arg1: i32) -> (i32, i32) {
    %c0_i32 = arith.constant 0 : i32
    %c0_i32_0 = arith.constant 0 : i32
    return %c0_i32, %arg1 : i32, i32
  }
  func.func @transform_7(%arg0: i32, %arg1: i32) -> (i32, i32) {
    %c0_i32 = arith.constant 0 : i32
    return %arg0, %arg1 : i32, i32
  }
}

</mosaic_0001>

<bundles_post_ra>
// kernel: tpu_custom_call.1
= control target key start
LH: loop header
LB: loop body
LE: loop exit
PB: predicated region body
PF: predicated region fallthrough
CT: control target
= control target key end

     0   :  { %12 = vsyncpa [#allocation4], 0  ;;  %s665_s0 = inlined_call_operand.vmem [shape: f32[16,128], index: 0, kind: input, shape index: {}]   ;;  %s666_s1 = inlined_call_operand.vmem [shape: s32[16,1], index: 1, kind: input, shape index: {}]   ;;  %s667_s2 = inlined_call_operand.vmem [shape: s32[16,1], index: 2, kind: input, shape index: {}]   ;;  %s668_s3 = inlined_call_operand.hbm [shape: f32[8,128], index: 3, kind: input, shape index: {}]   ;;  %s669_s4 = inlined_call_operand.vmem [shape: f32[16,128], index: 4, kind: input, shape index: {}]   ;;  %s670_s5 = inlined_call_operand.hbm [shape: bf16[128,256], index: 5, kind: input, shape index: {}]   ;;  %s671_s6 = inlined_call_operand.vmem [shape: f32[1,256], index: 6, kind: input, shape index: {}]   ;;  %s672_s7 = inlined_call_operand.hbm [shape: f32[16,256], index: 7, kind: output, shape index: {}]  }
   0x1   :  { %13 = vsyncpa [#allocation7], 0 }
   0x2   :  { %14 = vsyncpa [#allocation5], 0  ;;  %s26_s26 = sshll.u32 %s668_s3, 4  ;;  %s563_s27 = smov [#allocation3]   ;;  %s27_s26 = int_to_ptr.hbm [resolvable:$true] %s26_s26 }
   0x3   :  { %s28_s28 = sshll.u32 %s563_s27, 4  ;;  %s38_s8 = sshll.u32 %s670_s5, 4  ;;  %s29_s28 = int_to_ptr.vmem [resolvable:$true] %s28_s28  ;;  %s39_s8 = int_to_ptr.hbm [resolvable:$true] %s38_s8 }
   0x4   :  { %31 = dma.hbm_to_vmem [thread:$0]  %s27_s26, 128, %s29_s28, [#allocation4]  }
   0x5   :  { %s564_s9 = smov [#allocation6]   ;;  %s565_s11 = smov 128  }
   0x6   :  { %s40_s10 = sshll.u32 %s564_s9, 4  ;;  %s566_s12 = smov 8   ;;  %s41_s10 = int_to_ptr.vmem [resolvable:$true] %s40_s10 }
   0x7   :  { %46 = dma.hbm_to_vmem [thread:$0]  %s39_s8, 2048, %s41_s10, [#allocation7], %s565_s11, %s565_s11, %s566_s12  }
   0x8   :  { %557 = dma.done.wait [#allocation4], 128  }
   0x9   :  { %558 = vsyncadd [#allocation4], 4294967168 }
   0xa   :  { %559 = dma.done.wait [#allocation7], 2048  }
   0xb   :  { %560 = vsyncadd [#allocation7], 4294965248  ;;  %v567_v0 = vmov 0   ;;  %v64_v1 = vld [vmem:[%s666_s1 + $0x8] sm:$0xff]  ;;  %v63_v2 = vld [vmem:[%s666_s1] sm:$0xff]  ;;  %v65_v8 = vlaneseq  ;;  %vm94_vm0 = vcmask 64512  }
   0xc   :  { %480 = vset.pattern.permute.xlu1 %v567_v0  ;;  %479 = vset.pattern.permute.xlu0 %v567_v0  ;;  %v80_v3 = vld [vmem:[%s667_s2 + $0x8] sm:$0xff]  ;;  %v79_v4 = vld [vmem:[%s667_s2] sm:$0xff]  ;;  %v568_v12 = vmov 0.0   ;;  %vm128_vm3 = vcmask 130048   ;;  %v434_v37 = vld [vmem:[#allocation6 + $0x60] sm:$0xf] }
   0xd   :  { %71 = vperm.xlu1 %480, %v64_v1   ;;  %68 = vperm.xlu0 %479, %v63_v2   ;;  %v93_v5 = vld [vmem:[#allocation3] sm:$0xff]  ;;  %v126_v7 = vld [vmem:[%s669_s4] sm:$0xff]  ;;  %v66_v9 = vand.u32 127, %v65_v8  ;;  %v462_v38 = vld [vmem:[#allocation6 + $0x64] sm:$0xf0]  ;;  %s569_s25 = smov [#allocation8]  }
   0xe   :  { %116 = vmatpush.msra.mxu0 %v93_v5  ;;  %v127_v6 = vld [vmem:[%s669_s4 + $0x8] sm:$0xff]  ;;  %v61_v20 = vld [vmem:[%s665_s0] sm:$0xff]  ;;  %v461_v39 = vld [vmem:[#allocation6 + $0x64] sm:$0xf]  ;;  %v435_v40 = vor.u32 %v462_v38, %v434_v37  ;;  %s356_s26 = sshll.u32 %s569_s25, 4  ;;  %s358_s29 = sshll.u32 %s672_s7, 4  ;;  %s357_s26 = int_to_ptr.vmem [resolvable:$true] %s356_s26  ;;  %s359_s29 = int_to_ptr.hbm [resolvable:$true] %s358_s29 }
   0xf   :  { %149 = vmatpush.msra.mxu1 %v127_v6  ;;  %v62_v25 = vld [vmem:[%s665_s0 + $0x8] sm:$0xff]  ;;  %v442_v31 = vld [vmem:[#allocation6 + $0x70] sm:$0xf]  ;;  %v463_v33 = vld [vmem:[#allocation6 + $0x74] sm:$0xf]  ;;  %s571_s30 = smov 16  }
  0x10   :  { %v464_v32 = vld [vmem:[#allocation6 + $0x74] sm:$0xf0]  ;;  %v444_v35 = vld [vmem:[#allocation6 + $0x78] sm:$0xf0]  ;;  %v436_v41 = vld [vmem:[#allocation6 + $0x68] sm:$0xf0] }
  0x11   :  { %150 = vmatpush.msra.mxu1 %v126_v7  ;;  %v443_v34 = vor.u32 %v464_v32, %v442_v31  ;;  %v447_v36 = vor.u32 %v463_v33, %v444_v35  ;;  %v439_v42 = vor.u32 %v461_v39, %v436_v41  ;;  %v426_v43 = vld [vmem:[#allocation6 + $0x50] sm:$0xf]  ;;  %v460_v44 = vld [vmem:[#allocation6 + $0x54] sm:$0xf0]  ;;  %v459_v45 = vld [vmem:[#allocation6 + $0x54] sm:$0xf] }
  0x12   :  { %v427_v46 = vor.u32 %v460_v44, %v426_v43  ;;  %v428_v47 = vld [vmem:[#allocation6 + $0x58] sm:$0xf0]  ;;  %v418_v49 = vld [vmem:[#allocation6 + $0x40] sm:$0xf]  ;;  %v458_v50 = vld [vmem:[#allocation6 + $0x44] sm:$0xf0] }
  0x13   :  { %320 = vmatpush.bf16.msra.mxu2 %v443_v34  ;;  %334 = vmatpush.bf16.msra.mxu3 %v447_v36  ;;  %v431_v48 = vor.u32 %v459_v45, %v428_v47  ;;  %v457_v51 = vld [vmem:[#allocation6 + $0x44] sm:$0xf]  ;;  %v419_v52 = vor.u32 %v458_v50, %v418_v49  ;;  %v420_v53 = vld [vmem:[#allocation6 + $0x48] sm:$0xf0]  ;;  %v410_v57 = vld [vmem:[#allocation6 + $0x30] sm:$0xf] }
  0x14   :  { %v423_v54 = vor.u32 %v457_v51, %v420_v53  ;;  %v456_v58 = vld [vmem:[#allocation6 + $0x34] sm:$0xf0]  ;;  %v455_v61 = vld [vmem:[#allocation6 + $0x34] sm:$0xf]  ;;  %v412_v62 = vld [vmem:[#allocation6 + $0x38] sm:$0xf0] }
  0x15   :  { %85 = vperm.xlu1 %480, %v80_v3   ;;  %82 = vperm.xlu0 %479, %v79_v4   ;;  %v411_v60 = vor.u32 %v456_v58, %v410_v57  ;;  %v415_v1 = vor.u32 %v455_v61, %v412_v62  ;;  %v402_v3 = vld [vmem:[#allocation6 + $0x20] sm:$0xf]  ;;  %v454_v4 = vld [vmem:[#allocation6 + $0x24] sm:$0xf0]  ;;  %v453_v5 = vld [vmem:[#allocation6 + $0x24] sm:$0xf] }
  0x16   :  { %v403_v6 = vor.u32 %v454_v4, %v402_v3  ;;  %v404_v7 = vld [vmem:[#allocation6 + $0x28] sm:$0xf0]  ;;  %v228_v53 = vld [vmem:[%s671_s6] sm:$0x3]  ;;  %s570_s6 = smov 256  }
  0x17   :  { %321 = vmatpush.bf16.msra.mxu2 %v435_v40  ;;  %335 = vmatpush.bf16.msra.mxu3 %v439_v42 }
  0x1b   :  { %322 = vmatpush.bf16.msra.mxu2 %v427_v46  ;;  %336 = vmatpush.bf16.msra.mxu3 %v431_v48 }
  0x1f   :  { %323 = vmatpush.bf16.msra.mxu2 %v419_v52  ;;  %337 = vmatpush.bf16.msra.mxu3 %v423_v54  ;;  %v230_v54 = vperm.slane %v228_v53, 0 }
  0x23   :  { %324 = vmatpush.bf16.msra.mxu2 %v411_v60  ;;  %338 = vmatpush.bf16.msra.mxu3 %v415_v1 }
  0x27   :  { %325 = vmatpush.bf16.msra.mxu2 %v403_v6 }
  0x7f   :  { %v69_v10 = vpop.permute.xlu0 %68  ;;  %v72_v11 = vpop.permute.xlu1 %71 }
  0x80   :  { %vm73_vm1 = vcmp.eq.s32.totalorder %v69_v10, %v66_v9  ;;  %vm74_vm2 = vcmp.eq.s32.totalorder %v72_v11, %v66_v9 }
  0x81   :  { %v372_v13 = vsel %vm73_vm1, 1.0, %v568_v12  ;;  %v373_v14 = vsel %vm74_vm2, 1.0, %v568_v12 }
  0x82   :  { %376 = vmatmul.msk.f32.vlgmr.msra.gmra.mxu0 %vm94_vm0, %v372_v13  ;;  %v394_v13 = vld [vmem:[#allocation6 + $0x10] sm:$0xf] }
  0x87   :  { %v83_v15 = vpop.permute.xlu0 %82  ;;  %v86_v17 = vpop.permute.xlu1 %85 }
  0x88   :  { %vm87_vm4 = vcmp.eq.s32.totalorder %v83_v15, %v66_v9  ;;  %vm88_vm5 = vcmp.eq.s32.totalorder %v86_v17, %v66_v9  ;;  %v407_v9 = vor.u32 %v453_v5, %v404_v7  ;;  %v452_v15 = vld [vmem:[#allocation6 + $0x14] sm:$0xf0]  ;;  %v396_v17 = vld [vmem:[#allocation6 + $0x18] sm:$0xf0] }
  0x89   :  { %v374_v16 = vsel %vm87_vm4, 1.0, %v568_v12  ;;  %v375_v18 = vsel %vm88_vm5, 1.0, %v568_v12 }
  0x8a   :  { %377 = vmatmul.msk.f32.gmra.mxu0 %vm94_vm0, %v373_v14  ;;  %378 = vmatmul.msk.f32.vlgmr.msra.gmra.mxu1 %vm128_vm3, %v374_v16  ;;  %v451_v16 = vld [vmem:[#allocation6 + $0x14] sm:$0xf] }
  0x8b   :  { %339 = vmatpush.bf16.msra.mxu3 %v407_v9 }
  0x92   :  { %379 = vmatmul.msk.f32.gmra.mxu1 %vm128_vm3, %v375_v18 }
  0xff   :  { %v118_v19 = vpop.f32.mrf.mxu0 }
 0x100   :  { %v124_v21 = vadd.f32 %v118_v19, %v61_v20  ;;  %v386_v19 = vld [vmem:[#allocation6] sm:$0xf]  ;;  %v450_v20 = vld [vmem:[#allocation6 + $0x4] sm:$0xf0] }
 0x107   :  { %v152_v22 = vpop.f32.mrf.mxu1  ;;  %v121_v26 = vpop.f32.mrf.mxu0 }
 0x108   :  { %v639_v23 = vadd.f32 %v152_v22, %v124_v21  ;;  %v125_v27 = vadd.f32 %v121_v26, %v62_v25  ;;  %v449_v21 = vld [vmem:[#allocation6 + $0x4] sm:$0xf]  ;;  %v399_v25 = vor.u32 %v451_v16, %v396_v17  ;;  %v388_v26 = vld [vmem:[#allocation6 + $0x8] sm:$0xf0] }
 0x10a   :  { %160 = vadd.xlane.f32.xlu2 %v639_v23  ;;  %v164_v24 = vmul.f32 %v639_v23, %v639_v23  ;;  %340 = vmatpush.bf16.msra.mxu3 %v399_v25 }
 0x10c   :  { %166 = vadd.xlane.f32.xlu0 %v164_v24  ;;  %v395_v24 = vor.u32 %v452_v15, %v394_v13 }
 0x10e   :  { %326 = vmatpush.bf16.msra.mxu2 %v395_v24 }
 0x10f   :  { %v155_v28 = vpop.f32.mrf.mxu1 }
 0x110   :  { %v647_v29 = vadd.f32 %v155_v28, %v125_v27  ;;  %v387_v28 = vor.u32 %v450_v20, %v386_v19 }
 0x112   :  { %162 = vadd.xlane.f32.xlu2 %v647_v29  ;;  %v165_v30 = vmul.f32 %v647_v29, %v647_v29  ;;  %327 = vmatpush.bf16.msra.mxu2 %v387_v28 }
 0x114   :  { %168 = vadd.xlane.f32.xlu1 %v165_v30  ;;  %v391_v30 = vor.u32 %v449_v21, %v388_v26 }
 0x116   :  { %341 = vmatpush.bf16.msra.mxu3 %v391_v30 }
 0x17d   :  { %v161_v55 = vpop.xlane.xlu2 %160 }
 0x17e   :  { %v652_v56 = vmul.f32 0.0078125, %v161_v55  ;;  %v231_v55 = vperm.slane %v228_v53, 1 }
 0x17f   :  { %v167_v59 = vpop.xlane.xlu0 %166 }
 0x180   :  { %v174_v63 = vmul.f32 %v652_v56, %v652_v56  ;;  %v172_v0 = vmul.f32 0.0078125, %v167_v59  ;;  %v180_v46 = vsub.f32 %v639_v23, %v652_v56 }
 0x182   :  { %v176_v2 = vsub.f32 %v172_v0, %v174_v63 }
 0x184   :  { %v178_v8 = vmax.f32 %v176_v2, 0.0 }
 0x185   :  { %v163_v10 = vpop.xlane.xlu2 %162 }
 0x186   :  { %v182_v11 = vadd.f32 1e-12, %v178_v8  ;;  %v171_v12 = vmul.f32 0.0078125, %v163_v10 }
 0x187   :  { %v169_v14 = vpop.xlane.xlu1 %168 }
 0x188   :  { %481 = vrsqrt.f32 %v182_v11  ;;  %v175_v18 = vmul.f32 %v171_v12, %v171_v12  ;;  %v173_v22 = vmul.f32 0.0078125, %v169_v14  ;;  %vm190_vm7 = vweird.f32 %v182_v11 }
 0x189   :  { %v181_v47 = vsub.f32 %v647_v29, %v171_v12 }
 0x18a   :  { %v177_v27 = vsub.f32 %v173_v22, %v175_v18 }
 0x18c   :  { %v179_v31 = vmax.f32 %v177_v27, 0.0 }
 0x18e   :  { %v482_v32 = vpop.eup %481  ;;  %v183_v34 = vadd.f32 1e-12, %v179_v31 }
 0x18f   :  { %v185_v33 = vmul.f32 %v482_v32, %v182_v11  ;;  %vm191_vm6 = vweird.f32 %v482_v32 }
 0x190   :  { %483 = vrsqrt.f32 %v183_v34  ;;  %vm192_vm9 = vmor %vm190_vm7, %vm191_vm6  ;;  %vm200_vm10 = vweird.f32 %v183_v34 }
 0x191   :  { %v186_v35 = vmul.f32 %v482_v32, %v185_v33 }
 0x193   :  { %v187_v36 = vmul.f32 0.5, %v186_v35 }
 0x195   :  { %v188_v38 = vsub.f32 1.5, %v187_v36 }
 0x196   :  { %v484_v37 = vpop.eup %483 }
 0x197   :  { %v195_v39 = vmul.f32 %v484_v37, %v183_v34  ;;  %v189_v41 = vmul.f32 %v482_v32, %v188_v38  ;;  %vm201_vm8 = vweird.f32 %v484_v37 }
 0x198   :  { %vm202_vm11 = vmor %vm200_vm10, %vm201_vm8 }
 0x199   :  { %v196_v40 = vmul.f32 %v484_v37, %v195_v39  ;;  %v193_v44 = vsel %vm192_vm9, %v482_v32, %v189_v41 }
 0x19a   :  { %v204_v49 = vmul.f32 %v193_v44, %v180_v46 }
 0x19b   :  { %v197_v42 = vmul.f32 0.5, %v196_v40 }
 0x19d   :  { %v198_v43 = vsub.f32 1.5, %v197_v42 }
 0x19f   :  { %v199_v45 = vmul.f32 %v484_v37, %v198_v43 }
 0x1a1   :  { %v203_v48 = vsel %vm202_vm11, %v484_v37, %v199_v45 }
 0x1a2   :  { %v205_v50 = vmul.f32 %v203_v48, %v181_v47 }
 0x1a4   :  { %v468_v51 = vpack.c.bf16 %v205_v50, %v204_v49 }
 0x1a6   :  { %469 = vst [vmem:[#allocation2] sm:$0xff] %v468_v51  }
 0x1ad   :  { %v448_v52 = vld [vmem:[#allocation2] sm:$0xff] }
 0x1ae   :  { %328 = vmatmul.bf16.vlgmr.msra.gmra.mxu2 %v448_v52  ;;  %342 = vmatmul.bf16.vlgmr.msra.gmra.mxu3 %v448_v52 }
 0x231   :  { %v329_v57 = vpop.f32.mrf.mxu2  ;;  %v343_v58 = vpop.f32.mrf.mxu3 }
 0x232   :  { %v330_v23 = vadd.f32 %v329_v57, %v230_v54  ;;  %v344_v56 = vadd.f32 %v343_v58, %v231_v55 }
 0x234   :  { %348 = vst [vmem:[#allocation8] sm:$0xff] %v330_v23 }
 0x235   :  { %349 = vst [vmem:[#allocation8 + $0x8] sm:$0xff] %v344_v56 }
 0x239   :  { %v331_v29 = vpop.f32.mrf.mxu2  ;;  %v345_v59 = vpop.f32.mrf.mxu3 }
 0x23a   :  { %v332_v60 = vadd.f32 %v331_v29, %v230_v54  ;;  %v346_v61 = vadd.f32 %v345_v59, %v231_v55 }
 0x23c   :  { %350 = vst [vmem:[#allocation8 + $0x10] sm:$0xff] %v332_v60 }
 0x23d   :  { %351 = vst [vmem:[#allocation8 + $0x18] sm:$0xff] %v346_v61 }
 0x23e   :  { %364 = dma.vmem_to_hbm [thread:$0]  %s357_s26, 512, %s359_s29, [#allocation5], %s570_s6, %s570_s6, %s571_s30  }
 0x23f   :  { %561 = dma.done.wait [#allocation5], 512  }
 0x240   :  { %562 = vsyncadd [#allocation5], 4294966784 }
 0x241   :  { %369 = vsyncpa [#allocation4], 1 }
 0x242   :  { %370 = vsyncpa [#allocation7], 1 }
 0x243   :  { %371 = vsyncpa [#allocation5], 1 }

</bundles_post_ra>
